<compile_context>
chip_gen: v7x
topology: tpu7x:2x2x1
jax: 0.10.0
libtpu: 0.0.40
codegen_flags: <defaults>
</compile_context>

<pallas_src>
import functools

import jax
import jax.numpy as jnp
from jax import lax
from jax.experimental import pallas as pl
from jax.experimental.pallas import tpu as pltpu


def _round_up(x, m):
    return (x + m - 1) // m * m


def _conv_mm_kernel(p_ref, w_ref, b_ref, o_ref, acc_ref, *, tK):
    """One (rows x cout) tile of the im2col matmul, accumulated over K chunks.

    Grid = (row_tiles, cout_tiles, k_chunks), k innermost ("arbitrary").
    w_ref / b_ref hold the FULL (padded) weight / bias with a constant index
    map, so they are DMA'd once and stay VMEM-resident; the chunk needed for
    this grid step is sliced in-kernel.
    """
    j = pl.program_id(1)
    k = pl.program_id(2)

    @pl.when(k == 0)
    def _():
        acc_ref[...] = jnp.zeros_like(acc_ref)

    k0 = pl.multiple_of(k * tK, tK)                      # 128-aligned sublane offset
    w_blk = w_ref[j, pl.ds(k0, tK), :]                   # (tK, tN)
    acc_ref[...] += jnp.dot(p_ref[...], w_blk,
                            preferred_element_type=jnp.float32)

    @pl.when(k == pl.num_programs(2) - 1)
    def _():
        res = acc_ref[...] + b_ref[j]                    # (tM, tN) + (1, tN)
        # Store only the real Cout columns (masked vst when Cout < 128 keeps
        # HBM writes at 1x instead of padding to 128 lanes).
        o_ref[...] = res[:, : o_ref.shape[-1]].astype(o_ref.dtype)


def _pick_tiles(M, Kcp, Cout, dtb):
    """Choose (tM, tK, tN, Cp, nj, out widths, vmem limit) from VMEM capacity."""
    tN = 256 if (Cout >= 256 and Cout % 256 == 0) else 128
    Cp = _round_up(Cout, tN) if Cout >= 128 else 128      # padded matmul width
    nj = Cp // tN
    out_w = Cout if Cout < 128 else Cp                    # stored output width
    out_blk_w = Cout if Cout < 128 else tN

    try:
        vmem_cap = int(pltpu.get_tpu_info().vmem_capacity_bytes)
    except Exception:  # noqa: BLE001 - conservative default (v7x per-core VMEM)
        vmem_cap = 64 * 1024 * 1024
    vmem_limit = min(vmem_cap * 3 // 4, 96 * 1024 * 1024)
    budget = vmem_limit - 4 * 1024 * 1024

    # Resident (non-tiled) buffers: full weight + bias, double-buffered by Pallas.
    fixed = 2 * Kcp * Cp * dtb + 2 * nj * tN * 4

    def tile_bytes(tM, tK):
        return (2 * tM * tK * dtb          # patch double buffer
                + 2 * tM * out_blk_w * 4   # output double buffer (f32)
                + tM * tN * 4)             # f32 accumulator scratch

    # Prefer a single K chunk: every patch tile is then DMA'd exactly once.
    if fixed + tile_bytes(256, Kcp) <= budget:
        tK = Kcp
    else:
        tK = next(t for t in (2048, 1024, 512, 256, 128) if Kcp % t == 0)

    tM = 2048
    tM_cap = max(256, _round_up(M, 256))
    while tM > 256 and (tM > tM_cap or fixed + tile_bytes(tM, tK) > budget):
        tM //= 2

    return tM, tK, tN, Cp, nj, out_w, out_blk_w, vmem_limit


def _make_conv_matmul(Mp, Kcp, Cp, nj, out_w, out_blk_w, tM, tN, tK,
                      compute_dtype, vmem_limit):
    ni, nk = Mp // tM, Kcp // tK
    dtb = jnp.dtype(compute_dtype).itemsize
    cost = pl.CostEstimate(
        flops=2 * Mp * Kcp * Cp,
        transcendentals=0,
        bytes_accessed=(dtb * Mp * Kcp * (nj if nk > 1 else 1)   # patch stream
                        + dtb * Kcp * Cp + 4 * nj * tN           # weight + bias (once)
                        + 4 * Mp * out_w),                       # output
    )
    kernel = functools.partial(_conv_mm_kernel, tK=tK)
    return pl.pallas_call(
        kernel,
        out_shape=jax.ShapeDtypeStruct((Mp, out_w), jnp.float32),
        grid_spec=pltpu.PrefetchScalarGridSpec(
            num_scalar_prefetch=0,
            grid=(ni, nj, nk),
            in_specs=[
                # im2col patch tile: rows advance with i, depth chunk with k.
                pl.BlockSpec((tM, tK), lambda i, j, k: (i, k)),
                # full weight, constant index map -> fetched once, resident.
                pl.BlockSpec((nj, Kcp, tN), lambda i, j, k: (0, 0, 0)),
                # full bias, resident (f32).
                pl.BlockSpec((nj, 1, tN), lambda i, j, k: (0, 0, 0)),
            ],
            out_specs=pl.BlockSpec((tM, out_blk_w), lambda i, j, k: (i, j)),
            scratch_shapes=[pltpu.VMEM((tM, tN), jnp.float32)],
        ),
        compiler_params=pltpu.CompilerParams(
            dimension_semantics=("parallel", "parallel", "arbitrary"),
            vmem_limit_bytes=vmem_limit,
        ),
        cost_estimate=cost,
    )


def conv_forward(x, weight, bias, kernel_size=3, padding_mode="replicate",
                 compute_dtype=jnp.bfloat16):
    """Forward pass matching Conv(in_ch, out_ch, kernel_size=3, stride=1, bias=True).

    x      : (N, Cin, D, H, W) float32 (PyTorch NCDHW)
    weight : (Cout, Cin, K, K, K)
    bias   : (Cout,)
    returns: (N, Cout, D, H, W) float32
    """
    N, Cin, D, H, W = x.shape
    Cout = weight.shape[0]
    K = kernel_size
    P = K // 2
    dtb = jnp.dtype(compute_dtype).itemsize

    pad_mode = "edge" if padding_mode == "replicate" else "constant"
    # NCDHW -> NDHWC; cast to compute dtype *before* the 27x im2col so the big
    # intermediate is half-width when compute_dtype=bf16; replicate-pad spatial.
    x_cl = jnp.transpose(x, (0, 2, 3, 4, 1)).astype(compute_dtype)
    xpad = jnp.pad(x_cl, ((0, 0), (P, P), (P, P), (P, P), (0, 0)), mode=pad_mode)

    # im2col: fold the K^3 taps into the contraction dim.  Tap order is
    # (kd, kh, kw) major, cin minor -- must match the weight reshape below.
    slabs = []
    for kd in range(K):
        for kh in range(K):
            for kw in range(K):
                slabs.append(xpad[:, kd:kd + D, kh:kh + H, kw:kw + W, :])
    Kc = K * K * K * Cin
    M = N * D * H * W
    Kcp = _round_up(Kc, 128)                    # lane/sublane-aligned contraction

    tM, tK, tN, Cp, nj, out_w, out_blk_w, vmem_limit = _pick_tiles(M, Kcp, Cout, dtb)
    Mp = _round_up(M, tM)

    patches = jnp.concatenate(slabs, axis=-1).reshape(M, Kc)
    patches = jnp.pad(patches, ((0, Mp - M), (0, Kcp - Kc)))          # (Mp, Kcp)

    # Weight -> (nj, Kcp, tN): tap-major / cin-minor rows, zero-padded Kc & Cout.
    w2 = jnp.transpose(weight, (2, 3, 4, 1, 0)).reshape(Kc, Cout)
    w2 = jnp.pad(w2, ((0, Kcp - Kc), (0, Cp - Cout))).astype(compute_dtype)
    w3 = jnp.transpose(w2.reshape(Kcp, nj, tN), (1, 0, 2))
    # Bias -> (nj, 1, tN), kept f32 for the f32 epilogue.
    b2 = jnp.pad(bias.astype(jnp.float32).reshape(1, Cout), ((0, 0), (0, Cp - Cout)))
    b3 = jnp.transpose(b2.reshape(1, nj, tN), (1, 0, 2))

    out_flat = _make_conv_matmul(Mp, Kcp, Cp, nj, out_w, out_blk_w, tM, tN, tK,
                                 compute_dtype, vmem_limit)(patches, w3, b3)

    out = out_flat[:M, :Cout].reshape(N, D, H, W, Cout)
    return jnp.transpose(out, (0, 4, 1, 2, 3))                        # NCDHW


def _reference_conv3d(x, weight, bias, padding_mode="replicate"):
    K = weight.shape[-1]
    P = K // 2
    mode = "edge" if padding_mode == "replicate" else "constant"
    xpad = jnp.pad(x, ((0, 0), (0, 0), (P, P), (P, P), (P, P)), mode=mode)
    out = lax.conv_general_dilated(
        xpad, weight, window_strides=(1, 1, 1), padding="VALID",
        dimension_numbers=("NCDHW", "OIDHW", "NCDHW"))
    return out + bias.reshape(1, -1, 1, 1, 1)


if __name__ == "__main__":
    def run_case(N, Cin, Cout, D, H, W, K, compute_dtype, atol, rtol):
        key = jax.random.PRNGKey(0)
        kx, kw, kb = jax.random.split(key, 3)
        x = jax.random.normal(kx, (N, Cin, D, H, W), dtype=jnp.float32)
        weight = jax.random.normal(kw, (Cout, Cin, K, K, K), dtype=jnp.float32) * 0.1
        bias = jax.random.normal(kb, (Cout,), dtype=jnp.float32) * 0.1

        out = conv_forward(x, weight, bias, kernel_size=K,
                           compute_dtype=compute_dtype)
        out = jax.block_until_ready(out)
        assert out.shape == (N, Cout, D, H, W), out.shape

        ref = _reference_conv3d(x, weight, bias)
        max_err = float(jnp.max(jnp.abs(out - ref)))
        assert jnp.allclose(out, ref, atol=atol, rtol=rtol), max_err

    # 1) f32 path, module-default shapes (Cout < 128 -> unpadded masked stores).
    run_case(2, 4, 8, 8, 8, 8, 3, jnp.float32, 5e-3, 5e-3)
    # 2) bf16 inputs + f32 accumulation (perf-review default), looser tolerance.
    run_case(2, 4, 8, 8, 8, 8, 3, jnp.bfloat16, 1e-1, 5e-2)
    # 3) exercises Cout tiling (nj=2), Kc zero-padding and row padding.
    run_case(1, 12, 160, 6, 6, 6, 3, jnp.float32, 5e-3, 5e-3)

    print("KERNEL_OK")
</pallas_src>

<mosaic_0001>
module attributes {stable_mosaic.version = 11 : i64} {
  func.func @_conv_mm_kernel(%arg0: i32, %arg1: i32, %arg2: i32, %arg3: memref<1024x128xf32, #tpu.memory_space<vmem>>, %arg4: memref<1x128x128xf32, #tpu.memory_space<vmem>>, %arg5: memref<1x1x128xf32, #tpu.memory_space<vmem>>, %arg6: memref<1024x8xf32, #tpu.memory_space<vmem>>, %arg7: memref<1024x128xf32, #tpu.memory_space<vmem>>) attributes {dimension_semantics = [#tpu.dimension_semantics<parallel>, #tpu.dimension_semantics<parallel>, #tpu.dimension_semantics<arbitrary>], iteration_bounds = array<i64: 1, 1, 1>, scalar_prefetch = 0 : i64, scratch_operands = 1 : i64, tpu.core_type = #tpu.core_type<tc>, window_params = [{transform_indices = @transform_0, window_bounds = array<i64: 1024, 128>}, {pipeline_mode = #tpu.pipeline_mode<synchronous>, transform_indices = @transform_1, window_bounds = array<i64: 1, 128, 128>}, {pipeline_mode = #tpu.pipeline_mode<synchronous>, transform_indices = @transform_2, window_bounds = array<i64: 1, 1, 128>}, {transform_indices = @transform_3, window_bounds = array<i64: 1024, 8>}]} {
    %c0_i32 = arith.constant 0 : i32
    %0 = arith.cmpi eq, %arg2, %c0_i32 : i32
    %1 = arith.extui %0 : i1 to i32
    %c0_i32_0 = arith.constant 0 : i32
    %2 = arith.cmpi ne, %1, %c0_i32_0 : i32
    scf.if %2 {
      %cst_9 = arith.constant 0.000000e+00 : f32
      %17 = vector.broadcast %cst_9 : f32 to vector<1024x128xf32>
      %c0_10 = arith.constant 0 : index
      %c0_11 = arith.constant 0 : index
      %18 = vector.load %arg7[%c0_10, %c0_11] : memref<1024x128xf32, #tpu.memory_space<vmem>>, vector<1024x128xf32>
      tpu.vector_store %arg7[%c0_10, %c0_11], %17 {strides = array<i32>} : memref<1024x128xf32, #tpu.memory_space<vmem>>, vector<1024x128xf32>,
    } else {
    }
    %c128_i32 = arith.constant 128 : i32
    %3 = arith.muli %arg2, %c128_i32 : i32
    %4 = tpu.assume_multiple %3, 128 : i32
    %5 = arith.index_cast %arg1 : i32 to index
    %6 = arith.index_cast %4 : i32 to index
    %c0 = arith.constant 0 : index
    %7 = vector.load %arg4[%5, %6, %c0] : memref<1x128x128xf32, #tpu.memory_space<vmem>>, vector<1x128x128xf32>
    %8 = vector.shape_cast %7 : vector<1x128x128xf32> to vector<128x128xf32>
    %c0_1 = arith.constant 0 : index
    %c0_2 = arith.constant 0 : index
    %9 = vector.load %arg7[%c0_1, %c0_2] : memref<1024x128xf32, #tpu.memory_space<vmem>>, vector<1024x128xf32>
    %c0_3 = arith.constant 0 : index
    %c0_4 = arith.constant 0 : index
    %10 = vector.load %arg3[%c0_3, %c0_4] : memref<1024x128xf32, #tpu.memory_space<vmem>>, vector<1024x128xf32>
    %cst = arith.constant dense<0.000000e+00> : vector<1024x128xf32>
    %11 = tpu.matmul %10, %8, %cst {dimension_numbers = #tpu.dot_dimension_numbers<[1], [0], [0], [1], [0, 0, 1, 1], [], []>} : vector<1024x128xf32>, vector<128x128xf32>, vector<1024x128xf32> -> vector<1024x128xf32>
    %12 = arith.addf %9, %11 : vector<1024x128xf32>
    %c0_5 = arith.constant 0 : index
    %c0_6 = arith.constant 0 : index
    %13 = vector.load %arg7[%c0_5, %c0_6] : memref<1024x128xf32, #tpu.memory_space<vmem>>, vector<1024x128xf32>
    tpu.vector_store %arg7[%c0_5, %c0_6], %12 {strides = array<i32>} : memref<1024x128xf32, #tpu.memory_space<vmem>>, vector<1024x128xf32>,
    %c0_i32_7 = arith.constant 0 : i32
    %14 = arith.cmpi eq, %arg2, %c0_i32_7 : i32
    %15 = arith.extui %14 : i1 to i32
    %c0_i32_8 = arith.constant 0 : i32
    %16 = arith.cmpi ne, %15, %c0_i32_8 : i32
    scf.if %16 {
      %c0_9 = arith.constant 0 : index
      %c0_10 = arith.constant 0 : index
      %17 = vector.load %arg7[%c0_9, %c0_10] : memref<1024x128xf32, #tpu.memory_space<vmem>>, vector<1024x128xf32>
      %18 = arith.index_cast %arg1 : i32 to index
      %c0_11 = arith.constant 0 : index
      %c0_12 = arith.constant 0 : index
      %19 = vector.load %arg5[%18, %c0_11, %c0_12] : memref<1x1x128xf32, #tpu.memory_space<vmem>>, vector<1x1x128xf32>
      %20 = vector.shape_cast %19 : vector<1x1x128xf32> to vector<1x128xf32>
      %21 = vector.broadcast %20 : vector<1x128xf32> to vector<1024x128xf32>
      %22 = arith.addf %17, %21 : vector<1024x128xf32>
      %23 = vector.extract_strided_slice %22 {offsets = [0, 0], sizes = [1024, 8], strides = [1, 1]} : vector<1024x128xf32> to vector<1024x8xf32>
      %c0_13 = arith.constant 0 : index
      %c0_14 = arith.constant 0 : index
      %24 = vector.load %arg6[%c0_13, %c0_14] : memref<1024x8xf32, #tpu.memory_space<vmem>>, vector<1024x8xf32>
      tpu.vector_store %arg6[%c0_13, %c0_14], %23 {strides = array<i32>} : memref<1024x8xf32, #tpu.memory_space<vmem>>, vector<1024x8xf32>,
    } else {
    }
    return
  }
  func.func @transform_0(%arg0: i32, %arg1: i32, %arg2: i32) -> (i32, i32) {
    %c0_i32 = arith.constant 0 : i32
    return %arg0, %arg2 : i32, i32
  }
  func.func @transform_1(%arg0: i32, %arg1: i32, %arg2: i32) -> (i32, i32, i32) {
    %c0_i32 = arith.constant 0 : i32
    %c0_i32_0 = arith.constant 0 : i32
    %c0_i32_1 = arith.constant 0 : i32
    %c0_i32_2 = arith.constant 0 : i32
    return %c0_i32, %c0_i32_0, %c0_i32_1 : i32, i32, i32
  }
  func.func @transform_2(%arg0: i32, %arg1: i32, %arg2: i32) -> (i32, i32, i32) {
    %c0_i32 = arith.constant 0 : i32
    %c0_i32_0 = arith.constant 0 : i32
    %c0_i32_1 = arith.constant 0 : i32
    %c0_i32_2 = arith.constant 0 : i32
    return %c0_i32, %c0_i32_0, %c0_i32_1 : i32, i32, i32
  }
  func.func @transform_3(%arg0: i32, %arg1: i32, %arg2: i32) -> (i32, i32) {
    %c0_i32 = arith.constant 0 : i32
    return %arg0, %arg1 : i32, i32
  }
}

</mosaic_0001>

<bundles_post_ra>
// kernel: tpu_custom_call.1
= control target key start
LH: loop header
LB: loop body
LE: loop exit
PB: predicated region body
PF: predicated region fallthrough
CT: control target
= control target key end

     0   :  { %8 = vsyncpa [#allocation4], 0  ;;  %s2974_s0 = inlined_call_operand.hbm [shape: f32[1024,128], index: 0, kind: input, shape index: {}]   ;;  %s2975_s1 = inlined_call_operand.hbm [shape: f32[1,128,128], index: 1, kind: input, shape index: {}]   ;;  %s2976_s2 = inlined_call_operand.vmem [shape: f32[1,1,128], index: 2, kind: input, shape index: {}]   ;;  %s2977_s3 = inlined_call_operand.vmem [shape: f32[1024,8], index: 3, kind: output, shape index: {}]  }
   0x1   :  { %9 = vsyncpa [#allocation6], 0  ;;  %s2281_s12 = smov [#allocation3]   ;;  %s2233_s16 = scalar_lea.hbm %s2974_s0, 16384 }
   0x2   :  { %s15_s13 = sshll.u32 %s2281_s12, 4  ;;  %p2234_p0 = scmp.ne.s32.totalorder %s2974_s0, %s2233_s16  ;;  %s16_s13 = int_to_ptr.vmem [resolvable:$true] %s15_s13 }
   0x3   :  { %p2237_p1 = scmp.lt.u32.totalorder %s2233_s16, %s2974_s0 }
   0x5   :  { %p2239_p2 = pnand %p2237_p1, %p2234_p0 }
   0x7   :  { %2242 = shalt.err (!%p2239_p2)
}
   0x8   :  { %s2243_s21 = scalar_lea.vmem %s16_s13, 16384  ;;  %p2248_p4 = scmp.lt.s32.totalorder %s16_s13, %s16_s13 }
   0x9   :  { %p2244_p3 = scmp.ne.s32.totalorder %s16_s13, %s2243_s21  ;;  %p2249_p5 = scmp.lt.s32.totalorder %s2243_s21, %s2243_s21 }
   0xb   :  { %p2250_p6 = por %p2249_p5, %p2248_p4 }
   0xd   :  { %p2251_p7 = pnand %p2250_p6, %p2244_p3 }
   0xf   :  { %2254 = shalt.err (!%p2251_p7)
}
  0x10   :  { %s2282_s22 = smov 128   ;;  %s2283_s23 = smov 8  }
  0x11   :  { %21 = dma.hbm_to_vmem [thread:$0]  %s2974_s0, 16384, %s16_s13, [#allocation4], %s2282_s22, %s2282_s22, %s2283_s23  }
  0x12   :  { %s2284_s26 = smov [#allocation5]   ;;  %s2255_s30 = scalar_lea.hbm %s2975_s1, 2048 }
  0x13   :  { %s27_s27 = sshll.u32 %s2284_s26, 4  ;;  %p2256_p8 = scmp.ne.s32.totalorder %s2975_s1, %s2255_s30  ;;  %s28_s27 = int_to_ptr.vmem [resolvable:$true] %s27_s27 }
  0x14   :  { %p2259_p9 = scmp.lt.u32.totalorder %s2255_s30, %s2975_s1 }
  0x16   :  { %p2261_p10 = pnand %p2259_p9, %p2256_p8 }
  0x18   :  { %2264 = shalt.err (!%p2261_p10)
}
  0x19   :  { %s2265_s8 = scalar_lea.vmem %s28_s27, 2048  ;;  %p2270_p12 = scmp.lt.s32.totalorder %s28_s27, %s28_s27 }
  0x1a   :  { %p2266_p11 = scmp.ne.s32.totalorder %s28_s27, %s2265_s8  ;;  %p2271_p13 = scmp.lt.s32.totalorder %s2265_s8, %s2265_s8 }
  0x1c   :  { %p2272_p0 = por %p2271_p13, %p2270_p12 }
  0x1e   :  { %p2273_p1 = pnand %p2272_p0, %p2266_p11 }
  0x20   :  { %2276 = shalt.err (!%p2273_p1)
}
  0x21   :  { %33 = dma.hbm_to_vmem [thread:$0]  %s2975_s1, 2048, %s28_s27, [#allocation6], %s2282_s22, %s2282_s22, %s2283_s23  }
  0x22   :  { %2277 = dma.done.wait [#allocation4], 16384  }
  0x23   :  { %2278 = vsyncadd [#allocation4], 4294950912 }
  0x24   :  { %2279 = dma.done.wait [#allocation6], 2048  }
  0x25   :  { %2280 = vsyncadd [#allocation6], 4294965248  ;;  %v178_v0 = vld [vmem:[#allocation5] sm:$0xff]  ;;  %v179_v1 = vld [vmem:[#allocation5 + $0x8] sm:$0xff]  ;;  %vm1677_vm0 = vcmask 64512  }
  0x26   :  { %v180_v2 = vld [vmem:[#allocation5 + $0x10] sm:$0xff]  ;;  %v2181_v3 = vpack.c.bf16 %v179_v1, %v178_v0  ;;  %v181_v4 = vld [vmem:[#allocation5 + $0x18] sm:$0xff]  ;;  %v182_v6 = vld [vmem:[#allocation5 + $0x20] sm:$0xff] }
  0x27   :  { %v2185_v5 = vpack.c.bf16 %v181_v4, %v180_v2  ;;  %v183_v7 = vld [vmem:[#allocation5 + $0x28] sm:$0xff]  ;;  %v322_v9 = vld [vmem:[#allocation3] sm:$0xff]  ;;  %v184_v11 = vld [vmem:[#allocation5 + $0x30] sm:$0xff] }
  0x28   :  { %2182 = vmatprep.subr.bf16.mxu0 %v2181_v3  ;;  %2213 = vmatprep.subr.bf16.mxu1 %v2181_v3  ;;  %v2189_v8 = vpack.c.bf16 %v183_v7, %v182_v6  ;;  %v386_v10 = vld [vmem:[#allocation3 + $0x200] sm:$0xff]  ;;  %v185_v12 = vld [vmem:[#allocation5 + $0x38] sm:$0xff]  ;;  %v187_v15 = vld [vmem:[#allocation5 + $0x48] sm:$0xff] }
  0x29   :  { %2184 = vmatpush3.bf16.msra.mxu0 %v2181_v3  ;;  %2221 = vmatpush3.bf16.msra.mxu1 %v2181_v3  ;;  %v2193_v13 = vpack.c.bf16 %v185_v12, %v184_v11  ;;  %v186_v14 = vld [vmem:[#allocation5 + $0x40] sm:$0xff]  ;;  %v188_v17 = vld [vmem:[#allocation5 + $0x50] sm:$0xff]  ;;  %v189_v18 = vld [vmem:[#allocation5 + $0x58] sm:$0xff] }
  0x2a   :  { %2186 = vmatprep.subr.bf16.mxu0 %v2185_v5  ;;  %2214 = vmatprep.subr.bf16.mxu1 %v2185_v5  ;;  %v2197_v16 = vpack.c.bf16 %v187_v15, %v186_v14  ;;  %v2201_v19 = vpack.c.bf16 %v189_v18, %v188_v17  ;;  %v190_v20 = vld [vmem:[#allocation5 + $0x60] sm:$0xff]  ;;  %v191_v21 = vld [vmem:[#allocation5 + $0x68] sm:$0xff]  ;;  %v192_v23 = vld [vmem:[#allocation5 + $0x70] sm:$0xff] }
  0x2b   :  { %1989 = vmatprep.mubr.f32.mxu0 %v322_v9  ;;  %2085 = vmatprep.mubr.f32.mxu1 %v386_v10  ;;  %v2205_v22 = vpack.c.bf16 %v191_v21, %v190_v20  ;;  %v193_v24 = vld [vmem:[#allocation5 + $0x78] sm:$0xff]  ;;  %v323_v26 = vld [vmem:[#allocation3 + $0x8] sm:$0xff]  ;;  %v324_v28 = vld [vmem:[#allocation3 + $0x10] sm:$0xff] }
  0x2c   :  { %v2209_v25 = vpack.c.bf16 %v193_v24, %v192_v23  ;;  %v387_v27 = vld [vmem:[#allocation3 + $0x208] sm:$0xff]  ;;  %v388_v29 = vld [vmem:[#allocation3 + $0x210] sm:$0xff]  ;;  %v325_v30 = vld [vmem:[#allocation3 + $0x18] sm:$0xff] }
  0x2d   :  { %2188 = vmatpush3.bf16.msra.mxu0 %v2185_v5  ;;  %2222 = vmatpush3.bf16.msra.mxu1 %v2185_v5  ;;  %v389_v31 = vld [vmem:[#allocation3 + $0x218] sm:$0xff]  ;;  %v326_v32 = vld [vmem:[#allocation3 + $0x20] sm:$0xff]  ;;  %v327_v34 = vld [vmem:[#allocation3 + $0x28] sm:$0xff] }
  0x2e   :  { %2190 = vmatprep.subr.bf16.mxu0 %v2189_v8  ;;  %2215 = vmatprep.subr.bf16.mxu1 %v2189_v8  ;;  %v390_v33 = vld [vmem:[#allocation3 + $0x220] sm:$0xff]  ;;  %v391_v35 = vld [vmem:[#allocation3 + $0x228] sm:$0xff]  ;;  %v328_v36 = vld [vmem:[#allocation3 + $0x30] sm:$0xff] }
  0x2f   :  { %v392_v37 = vld [vmem:[#allocation3 + $0x230] sm:$0xff]  ;;  %v329_v38 = vld [vmem:[#allocation3 + $0x38] sm:$0xff]  ;;  %v330_v40 = vld [vmem:[#allocation3 + $0x40] sm:$0xff] }
  0x30   :  { %v393_v39 = vld [vmem:[#allocation3 + $0x238] sm:$0xff]  ;;  %v394_v41 = vld [vmem:[#allocation3 + $0x240] sm:$0xff]  ;;  %v331_v42 = vld [vmem:[#allocation3 + $0x48] sm:$0xff] }
  0x31   :  { %2192 = vmatpush3.bf16.msra.mxu0 %v2189_v8  ;;  %2223 = vmatpush3.bf16.msra.mxu1 %v2189_v8  ;;  %v395_v43 = vld [vmem:[#allocation3 + $0x248] sm:$0xff]  ;;  %v332_v44 = vld [vmem:[#allocation3 + $0x50] sm:$0xff]  ;;  %v333_v46 = vld [vmem:[#allocation3 + $0x58] sm:$0xff] }
  0x32   :  { %2194 = vmatprep.subr.bf16.mxu0 %v2193_v13  ;;  %2216 = vmatprep.subr.bf16.mxu1 %v2193_v13  ;;  %v396_v45 = vld [vmem:[#allocation3 + $0x250] sm:$0xff]  ;;  %v397_v47 = vld [vmem:[#allocation3 + $0x258] sm:$0xff]  ;;  %v334_v48 = vld [vmem:[#allocation3 + $0x60] sm:$0xff] }
  0x33   :  { %v398_v49 = vld [vmem:[#allocation3 + $0x260] sm:$0xff]  ;;  %v335_v50 = vld [vmem:[#allocation3 + $0x68] sm:$0xff]  ;;  %v336_v52 = vld [vmem:[#allocation3 + $0x70] sm:$0xff] }
  0x34   :  { %v399_v51 = vld [vmem:[#allocation3 + $0x268] sm:$0xff]  ;;  %v400_v53 = vld [vmem:[#allocation3 + $0x270] sm:$0xff]  ;;  %v337_v54 = vld [vmem:[#allocation3 + $0x78] sm:$0xff] }
  0x35   :  { %2196 = vmatpush3.bf16.msra.mxu0 %v2193_v13  ;;  %2224 = vmatpush3.bf16.msra.mxu1 %v2193_v13  ;;  %v401_v55 = vld [vmem:[#allocation3 + $0x278] sm:$0xff]  ;;  %v338_v56 = vld [vmem:[#allocation3 + $0x80] sm:$0xff]  ;;  %v339_v58 = vld [vmem:[#allocation3 + $0x88] sm:$0xff] }
  0x36   :  { %2198 = vmatprep.subr.bf16.mxu0 %v2197_v16  ;;  %2217 = vmatprep.subr.bf16.mxu1 %v2197_v16  ;;  %v402_v57 = vld [vmem:[#allocation3 + $0x280] sm:$0xff]  ;;  %v403_v59 = vld [vmem:[#allocation3 + $0x288] sm:$0xff]  ;;  %v340_v60 = vld [vmem:[#allocation3 + $0x90] sm:$0xff] }
  0x37   :  { %v404_v61 = vld [vmem:[#allocation3 + $0x290] sm:$0xff]  ;;  %v341_v62 = vld [vmem:[#allocation3 + $0x98] sm:$0xff]  ;;  %v342_v0 = vld [vmem:[#allocation3 + $0xa0] sm:$0xff] }
  0x38   :  { %v405_v63 = vld [vmem:[#allocation3 + $0x298] sm:$0xff]  ;;  %v406_v1 = vld [vmem:[#allocation3 + $0x2a0] sm:$0xff]  ;;  %v343_v2 = vld [vmem:[#allocation3 + $0xa8] sm:$0xff] }
  0x39   :  { %2200 = vmatpush3.bf16.msra.mxu0 %v2197_v16  ;;  %2225 = vmatpush3.bf16.msra.mxu1 %v2197_v16  ;;  %v407_v3 = vld [vmem:[#allocation3 + $0x2a8] sm:$0xff]  ;;  %v344_v4 = vld [vmem:[#allocation3 + $0xb0] sm:$0xff]  ;;  %v345_v6 = vld [vmem:[#allocation3 + $0xb8] sm:$0xff] }
  0x3a   :  { %2202 = vmatprep.subr.bf16.mxu0 %v2201_v19  ;;  %2218 = vmatprep.subr.bf16.mxu1 %v2201_v19  ;;  %v408_v5 = vld [vmem:[#allocation3 + $0x2b0] sm:$0xff]  ;;  %v409_v7 = vld [vmem:[#allocation3 + $0x2b8] sm:$0xff]  ;;  %v346_v8 = vld [vmem:[#allocation3 + $0xc0] sm:$0xff] }
  0x3b   :  { %v410_v9 = vld [vmem:[#allocation3 + $0x2c0] sm:$0xff]  ;;  %v347_v10 = vld [vmem:[#allocation3 + $0xc8] sm:$0xff]  ;;  %v348_v12 = vld [vmem:[#allocation3 + $0xd0] sm:$0xff] }
  0x3c   :  { %v411_v11 = vld [vmem:[#allocation3 + $0x2c8] sm:$0xff]  ;;  %v412_v13 = vld [vmem:[#allocation3 + $0x2d0] sm:$0xff]  ;;  %v349_v14 = vld [vmem:[#allocation3 + $0xd8] sm:$0xff] }
  0x3d   :  { %2204 = vmatpush3.bf16.msra.mxu0 %v2201_v19  ;;  %2226 = vmatpush3.bf16.msra.mxu1 %v2201_v19  ;;  %v413_v15 = vld [vmem:[#allocation3 + $0x2d8] sm:$0xff]  ;;  %v350_v16 = vld [vmem:[#allocation3 + $0xe0] sm:$0xff]  ;;  %v351_v18 = vld [vmem:[#allocation3 + $0xe8] sm:$0xff] }
  0x3e   :  { %2206 = vmatprep.subr.bf16.mxu0 %v2205_v22  ;;  %2219 = vmatprep.subr.bf16.mxu1 %v2205_v22  ;;  %v414_v17 = vld [vmem:[#allocation3 + $0x2e0] sm:$0xff]  ;;  %v415_v19 = vld [vmem:[#allocation3 + $0x2e8] sm:$0xff]  ;;  %v352_v20 = vld [vmem:[#allocation3 + $0xf0] sm:$0xff] }
  0x3f   :  { %v416_v21 = vld [vmem:[#allocation3 + $0x2f0] sm:$0xff]  ;;  %v417_v23 = vld [vmem:[#allocation3 + $0x2f8] sm:$0xff]  ;;  %v354_v24 = vld [vmem:[#allocation3 + $0x100] sm:$0xff] }
  0x41   :  { %2208 = vmatpush3.bf16.msra.mxu0 %v2205_v22  ;;  %2227 = vmatpush3.bf16.msra.mxu1 %v2205_v22  ;;  %v353_v22 = vld [vmem:[#allocation3 + $0xf8] sm:$0xff] }
  0x42   :  { %2210 = vmatprep.subr.bf16.mxu0 %v2209_v25  ;;  %2220 = vmatprep.subr.bf16.mxu1 %v2209_v25 }
  0x45   :  { %2212 = vmatpush3.bf16.msra.mxu0 %v2209_v25  ;;  %2228 = vmatpush3.bf16.msra.mxu1 %v2209_v25  ;;  %v418_v25 = vld [vmem:[#allocation3 + $0x300] sm:$0xff] }
  0x48   :  { %1990 = vmatmul.mubr.f32.vlgmr.msra.gmra.mrb[0].mxu0 %v323_v26  ;;  %2086 = vmatmul.mubr.f32.vlgmr.msra.gmra.mrb[0].mxu1 %v387_v27  ;;  %v355_v26 = vld [vmem:[#allocation3 + $0x108] sm:$0xff] }
  0x49   :  { %1992 = vmatprep.mubr.f32.mxu0 %v324_v28  ;;  %2088 = vmatprep.mubr.f32.mxu1 %v388_v29  ;;  %v419_v27 = vld [vmem:[#allocation3 + $0x308] sm:$0xff]  ;;  %v356_v28 = vld [vmem:[#allocation3 + $0x110] sm:$0xff] }
  0x4a   :  { %v420_v29 = vld [vmem:[#allocation3 + $0x310] sm:$0xff] }
  0x4c   :  { %1993 = vmatmul.mubr.f32.gmra.mrb[2].mxu0 %v325_v30  ;;  %2089 = vmatmul.mubr.f32.gmra.mrb[2].mxu1 %v389_v31  ;;  %v357_v30 = vld [vmem:[#allocation3 + $0x118] sm:$0xff] }
  0x4d   :  { %1995 = vmatprep.mubr.f32.mxu0 %v326_v32  ;;  %2091 = vmatprep.mubr.f32.mxu1 %v390_v33  ;;  %v421_v31 = vld [vmem:[#allocation3 + $0x318] sm:$0xff]  ;;  %v358_v32 = vld [vmem:[#allocation3 + $0x120] sm:$0xff] }
  0x4e   :  { %v422_v33 = vld [vmem:[#allocation3 + $0x320] sm:$0xff] }
  0x50   :  { %1996 = vmatmul.mubr.f32.gmra.mrb[4].mxu0 %v327_v34  ;;  %2092 = vmatmul.mubr.f32.gmra.mrb[4].mxu1 %v391_v35  ;;  %v359_v34 = vld [vmem:[#allocation3 + $0x128] sm:$0xff] }
  0x51   :  { %1998 = vmatprep.mubr.f32.mxu0 %v328_v36  ;;  %2094 = vmatprep.mubr.f32.mxu1 %v392_v37  ;;  %v423_v35 = vld [vmem:[#allocation3 + $0x328] sm:$0xff]  ;;  %v360_v36 = vld [vmem:[#allocation3 + $0x130] sm:$0xff] }
  0x52   :  { %v424_v37 = vld [vmem:[#allocation3 + $0x330] sm:$0xff] }
  0x54   :  { %1999 = vmatmul.mubr.f32.gmra.mrb[6].mxu0 %v329_v38  ;;  %2095 = vmatmul.mubr.f32.gmra.mrb[6].mxu1 %v393_v39  ;;  %v361_v38 = vld [vmem:[#allocation3 + $0x138] sm:$0xff] }
  0x55   :  { %2001 = vmatprep.mubr.f32.mxu0 %v330_v40  ;;  %2097 = vmatprep.mubr.f32.mxu1 %v394_v41  ;;  %v425_v39 = vld [vmem:[#allocation3 + $0x338] sm:$0xff]  ;;  %v362_v40 = vld [vmem:[#allocation3 + $0x140] sm:$0xff] }
  0x56   :  { %v426_v41 = vld [vmem:[#allocation3 + $0x340] sm:$0xff] }
  0x58   :  { %2002 = vmatmul.mubr.f32.gmra.mrb[8].mxu0 %v331_v42  ;;  %2098 = vmatmul.mubr.f32.gmra.mrb[8].mxu1 %v395_v43  ;;  %v363_v42 = vld [vmem:[#allocation3 + $0x148] sm:$0xff] }
  0x59   :  { %2004 = vmatprep.mubr.f32.mxu0 %v332_v44  ;;  %2100 = vmatprep.mubr.f32.mxu1 %v396_v45  ;;  %v427_v43 = vld [vmem:[#allocation3 + $0x348] sm:$0xff]  ;;  %v364_v44 = vld [vmem:[#allocation3 + $0x150] sm:$0xff] }
  0x5a   :  { %v428_v45 = vld [vmem:[#allocation3 + $0x350] sm:$0xff] }
  0x5c   :  { %2005 = vmatmul.mubr.f32.gmra.mrb[10].mxu0 %v333_v46  ;;  %2101 = vmatmul.mubr.f32.gmra.mrb[10].mxu1 %v397_v47  ;;  %v365_v46 = vld [vmem:[#allocation3 + $0x158] sm:$0xff] }
  0x5d   :  { %2007 = vmatprep.mubr.f32.mxu0 %v334_v48  ;;  %2103 = vmatprep.mubr.f32.mxu1 %v398_v49  ;;  %v429_v47 = vld [vmem:[#allocation3 + $0x358] sm:$0xff]  ;;  %v366_v48 = vld [vmem:[#allocation3 + $0x160] sm:$0xff] }
  0x5e   :  { %v430_v49 = vld [vmem:[#allocation3 + $0x360] sm:$0xff] }
  0x60   :  { %2008 = vmatmul.mubr.f32.gmra.mrb[12].mxu0 %v335_v50  ;;  %2104 = vmatmul.mubr.f32.gmra.mrb[12].mxu1 %v399_v51  ;;  %v367_v50 = vld [vmem:[#allocation3 + $0x168] sm:$0xff] }
  0x61   :  { %2010 = vmatprep.mubr.f32.mxu0 %v336_v52  ;;  %2106 = vmatprep.mubr.f32.mxu1 %v400_v53  ;;  %v431_v51 = vld [vmem:[#allocation3 + $0x368] sm:$0xff]  ;;  %v368_v52 = vld [vmem:[#allocation3 + $0x170] sm:$0xff] }
  0x62   :  { %v432_v53 = vld [vmem:[#allocation3 + $0x370] sm:$0xff] }
  0x64   :  { %2011 = vmatmul.mubr.f32.gmra.mrb[14].mxu0 %v337_v54  ;;  %2107 = vmatmul.mubr.f32.gmra.mrb[14].mxu1 %v401_v55  ;;  %v369_v54 = vld [vmem:[#allocation3 + $0x178] sm:$0xff] }
  0x65   :  { %2013 = vmatprep.mubr.f32.mxu0 %v338_v56  ;;  %2109 = vmatprep.mubr.f32.mxu1 %v402_v57  ;;  %v433_v55 = vld [vmem:[#allocation3 + $0x378] sm:$0xff]  ;;  %v370_v56 = vld [vmem:[#allocation3 + $0x180] sm:$0xff] }
  0x66   :  { %v434_v57 = vld [vmem:[#allocation3 + $0x380] sm:$0xff] }
  0x68   :  { %2014 = vmatmul.mubr.f32.gmra.mrb[16].mxu0 %v339_v58  ;;  %2110 = vmatmul.mubr.f32.gmra.mrb[16].mxu1 %v403_v59  ;;  %v371_v58 = vld [vmem:[#allocation3 + $0x188] sm:$0xff] }
  0x69   :  { %2016 = vmatprep.mubr.f32.mxu0 %v340_v60  ;;  %2112 = vmatprep.mubr.f32.mxu1 %v404_v61  ;;  %v435_v59 = vld [vmem:[#allocation3 + $0x388] sm:$0xff]  ;;  %v372_v60 = vld [vmem:[#allocation3 + $0x190] sm:$0xff] }
  0x6a   :  { %v436_v61 = vld [vmem:[#allocation3 + $0x390] sm:$0xff] }
  0x6c   :  { %2017 = vmatmul.mubr.f32.gmra.mrb[18].mxu0 %v341_v62  ;;  %2113 = vmatmul.mubr.f32.gmra.mrb[18].mxu1 %v405_v63  ;;  %v373_v62 = vld [vmem:[#allocation3 + $0x198] sm:$0xff] }
  0x6d   :  { %2019 = vmatprep.mubr.f32.mxu0 %v342_v0  ;;  %2115 = vmatprep.mubr.f32.mxu1 %v406_v1  ;;  %v437_v63 = vld [vmem:[#allocation3 + $0x398] sm:$0xff]  ;;  %v374_v0 = vld [vmem:[#allocation3 + $0x1a0] sm:$0xff] }
  0x6e   :  { %v438_v1 = vld [vmem:[#allocation3 + $0x3a0] sm:$0xff] }
  0x70   :  { %2020 = vmatmul.mubr.f32.gmra.mrb[20].mxu0 %v343_v2  ;;  %2116 = vmatmul.mubr.f32.gmra.mrb[20].mxu1 %v407_v3  ;;  %v375_v2 = vld [vmem:[#allocation3 + $0x1a8] sm:$0xff] }
  0x71   :  { %2022 = vmatprep.mubr.f32.mxu0 %v344_v4  ;;  %2118 = vmatprep.mubr.f32.mxu1 %v408_v5  ;;  %v439_v3 = vld [vmem:[#allocation3 + $0x3a8] sm:$0xff]  ;;  %v376_v4 = vld [vmem:[#allocation3 + $0x1b0] sm:$0xff] }
  0x72   :  { %v440_v5 = vld [vmem:[#allocation3 + $0x3b0] sm:$0xff] }
  0x74   :  { %2023 = vmatmul.mubr.f32.gmra.mrb[22].mxu0 %v345_v6  ;;  %2119 = vmatmul.mubr.f32.gmra.mrb[22].mxu1 %v409_v7  ;;  %v377_v6 = vld [vmem:[#allocation3 + $0x1b8] sm:$0xff] }
  0x75   :  { %2025 = vmatprep.mubr.f32.mxu0 %v346_v8  ;;  %2121 = vmatprep.mubr.f32.mxu1 %v410_v9  ;;  %v441_v7 = vld [vmem:[#allocation3 + $0x3b8] sm:$0xff]  ;;  %v378_v8 = vld [vmem:[#allocation3 + $0x1c0] sm:$0xff] }
  0x76   :  { %v442_v9 = vld [vmem:[#allocation3 + $0x3c0] sm:$0xff] }
  0x78   :  { %2026 = vmatmul.mubr.f32.gmra.mrb[24].mxu0 %v347_v10  ;;  %2122 = vmatmul.mubr.f32.gmra.mrb[24].mxu1 %v411_v11  ;;  %v379_v10 = vld [vmem:[#allocation3 + $0x1c8] sm:$0xff] }
  0x79   :  { %2028 = vmatprep.mubr.f32.mxu0 %v348_v12  ;;  %2124 = vmatprep.mubr.f32.mxu1 %v412_v13  ;;  %v443_v11 = vld [vmem:[#allocation3 + $0x3c8] sm:$0xff]  ;;  %v380_v12 = vld [vmem:[#allocation3 + $0x1d0] sm:$0xff] }
  0x7a   :  { %v444_v13 = vld [vmem:[#allocation3 + $0x3d0] sm:$0xff] }
  0x7c   :  { %2029 = vmatmul.mubr.f32.gmra.mrb[26].mxu0 %v349_v14  ;;  %2125 = vmatmul.mubr.f32.gmra.mrb[26].mxu1 %v413_v15  ;;  %v381_v14 = vld [vmem:[#allocation3 + $0x1d8] sm:$0xff] }
  0x7d   :  { %2031 = vmatprep.mubr.f32.mxu0 %v350_v16  ;;  %2127 = vmatprep.mubr.f32.mxu1 %v414_v17  ;;  %v445_v15 = vld [vmem:[#allocation3 + $0x3d8] sm:$0xff]  ;;  %v382_v16 = vld [vmem:[#allocation3 + $0x1e0] sm:$0xff] }
  0x7e   :  { %v446_v17 = vld [vmem:[#allocation3 + $0x3e0] sm:$0xff] }
  0x80   :  { %2032 = vmatmul.mubr.f32.gmra.mrb[28].mxu0 %v351_v18  ;;  %2128 = vmatmul.mubr.f32.gmra.mrb[28].mxu1 %v415_v19  ;;  %v383_v18 = vld [vmem:[#allocation3 + $0x1e8] sm:$0xff] }
  0x81   :  { %2034 = vmatprep.mubr.f32.mxu0 %v352_v20  ;;  %2130 = vmatprep.mubr.f32.mxu1 %v416_v21  ;;  %v447_v19 = vld [vmem:[#allocation3 + $0x3e8] sm:$0xff]  ;;  %v384_v20 = vld [vmem:[#allocation3 + $0x1f0] sm:$0xff] }
  0x82   :  { %v448_v21 = vld [vmem:[#allocation3 + $0x3f0] sm:$0xff] }
  0x84   :  { %2035 = vmatmul.mubr.f32.gmra.mrb[30].mxu0 %v353_v22  ;;  %2131 = vmatmul.mubr.f32.gmra.mrb[30].mxu1 %v417_v23  ;;  %v385_v22 = vld [vmem:[#allocation3 + $0x1f8] sm:$0xff] }
  0x85   :  { %2037 = vmatprep.mubr.f32.mxu0 %v354_v24  ;;  %2133 = vmatprep.mubr.f32.mxu1 %v418_v25  ;;  %v449_v23 = vld [vmem:[#allocation3 + $0x3f8] sm:$0xff]  ;;  %v2332_v24 = vld [vmem:[%s2976_s2] ss:$0 sm:$0xff] }
  0x88   :  { %2038 = vmatmul.mubr.f32.gmra.mrb[32].mxu0 %v355_v26  ;;  %2134 = vmatmul.mubr.f32.gmra.mrb[32].mxu1 %v419_v27 }
  0x89   :  { %2040 = vmatprep.mubr.f32.mxu0 %v356_v28  ;;  %2136 = vmatprep.mubr.f32.mxu1 %v420_v29 }
  0x8c   :  { %2041 = vmatmul.mubr.f32.gmra.mrb[34].mxu0 %v357_v30  ;;  %2137 = vmatmul.mubr.f32.gmra.mrb[34].mxu1 %v421_v31 }
  0x8d   :  { %2043 = vmatprep.mubr.f32.mxu0 %v358_v32  ;;  %2139 = vmatprep.mubr.f32.mxu1 %v422_v33 }
  0x90   :  { %2044 = vmatmul.mubr.f32.gmra.mrb[36].mxu0 %v359_v34  ;;  %2140 = vmatmul.mubr.f32.gmra.mrb[36].mxu1 %v423_v35 }
  0x91   :  { %2046 = vmatprep.mubr.f32.mxu0 %v360_v36  ;;  %2142 = vmatprep.mubr.f32.mxu1 %v424_v37 }
  0x94   :  { %2047 = vmatmul.mubr.f32.gmra.mrb[38].mxu0 %v361_v38  ;;  %2143 = vmatmul.mubr.f32.gmra.mrb[38].mxu1 %v425_v39 }
  0x95   :  { %2049 = vmatprep.mubr.f32.mxu0 %v362_v40  ;;  %2145 = vmatprep.mubr.f32.mxu1 %v426_v41 }
  0x98   :  { %2050 = vmatmul.mubr.f32.gmra.mrb[40].mxu0 %v363_v42  ;;  %2146 = vmatmul.mubr.f32.gmra.mrb[40].mxu1 %v427_v43 }
  0x99   :  { %2052 = vmatprep.mubr.f32.mxu0 %v364_v44  ;;  %2148 = vmatprep.mubr.f32.mxu1 %v428_v45 }
  0x9c   :  { %2053 = vmatmul.mubr.f32.gmra.mrb[42].mxu0 %v365_v46  ;;  %2149 = vmatmul.mubr.f32.gmra.mrb[42].mxu1 %v429_v47 }
  0x9d   :  { %2055 = vmatprep.mubr.f32.mxu0 %v366_v48  ;;  %2151 = vmatprep.mubr.f32.mxu1 %v430_v49 }
  0xa0   :  { %2056 = vmatmul.mubr.f32.gmra.mrb[44].mxu0 %v367_v50  ;;  %2152 = vmatmul.mubr.f32.gmra.mrb[44].mxu1 %v431_v51 }
  0xa1   :  { %2058 = vmatprep.mubr.f32.mxu0 %v368_v52  ;;  %2154 = vmatprep.mubr.f32.mxu1 %v432_v53 }
  0xa4   :  { %2059 = vmatmul.mubr.f32.gmra.mrb[46].mxu0 %v369_v54  ;;  %2155 = vmatmul.mubr.f32.gmra.mrb[46].mxu1 %v433_v55 }
  0xa5   :  { %2061 = vmatprep.mubr.f32.mxu0 %v370_v56  ;;  %2157 = vmatprep.mubr.f32.mxu1 %v434_v57 }
  0xa8   :  { %2062 = vmatmul.mubr.f32.gmra.mrb[48].mxu0 %v371_v58  ;;  %2158 = vmatmul.mubr.f32.gmra.mrb[48].mxu1 %v435_v59 }
  0xa9   :  { %2064 = vmatprep.mubr.f32.mxu0 %v372_v60  ;;  %2160 = vmatprep.mubr.f32.mxu1 %v436_v61 }
  0xac   :  { %2065 = vmatmul.mubr.f32.gmra.mrb[50].mxu0 %v373_v62  ;;  %2161 = vmatmul.mubr.f32.gmra.mrb[50].mxu1 %v437_v63 }
  0xad   :  { %2067 = vmatprep.mubr.f32.mxu0 %v374_v0  ;;  %2163 = vmatprep.mubr.f32.mxu1 %v438_v1 }
  0xb0   :  { %2068 = vmatmul.mubr.f32.gmra.mrb[52].mxu0 %v375_v2  ;;  %2164 = vmatmul.mubr.f32.gmra.mrb[52].mxu1 %v439_v3 }
  0xb1   :  { %2070 = vmatprep.mubr.f32.mxu0 %v376_v4  ;;  %2166 = vmatprep.mubr.f32.mxu1 %v440_v5 }
  0xb4   :  { %2071 = vmatmul.mubr.f32.gmra.mrb[54].mxu0 %v377_v6  ;;  %2167 = vmatmul.mubr.f32.gmra.mrb[54].mxu1 %v441_v7 }
  0xb5   :  { %2073 = vmatprep.mubr.f32.mxu0 %v378_v8  ;;  %2169 = vmatprep.mubr.f32.mxu1 %v442_v9 }
  0xb8   :  { %2074 = vmatmul.mubr.f32.gmra.mrb[56].mxu0 %v379_v10  ;;  %2170 = vmatmul.mubr.f32.gmra.mrb[56].mxu1 %v443_v11 }
  0xb9   :  { %2076 = vmatprep.mubr.f32.mxu0 %v380_v12  ;;  %2172 = vmatprep.mubr.f32.mxu1 %v444_v13 }
  0xbc   :  { %2077 = vmatmul.mubr.f32.gmra.mrb[58].mxu0 %v381_v14  ;;  %2173 = vmatmul.mubr.f32.gmra.mrb[58].mxu1 %v445_v15 }
  0xbd   :  { %2079 = vmatprep.mubr.f32.mxu0 %v382_v16  ;;  %2175 = vmatprep.mubr.f32.mxu1 %v446_v17 }
  0xc0   :  { %2080 = vmatmul.mubr.f32.gmra.mrb[60].mxu0 %v383_v18  ;;  %2176 = vmatmul.mubr.f32.gmra.mrb[60].mxu1 %v447_v19 }
  0xc1   :  { %2082 = vmatprep.mubr.f32.mxu0 %v384_v20  ;;  %2178 = vmatprep.mubr.f32.mxu1 %v448_v21 }
  0xc4   :  { %2083 = vmatmul.mubr.f32.gmra.mrb[62].mxu0 %v385_v22  ;;  %2179 = vmatmul.mubr.f32.gmra.mrb[62].mxu1 %v449_v23 }
 0x11b   :  { %v1991_v25 = vpop.f32.mrb[0].mxu0  ;;  %v2087_v26 = vpop.f32.mrb[0].mxu1 }
 0x11c   :  { %v1550_v27 = vadd.f32 %v1991_v25, %v2332_v24  ;;  %v1614_v28 = vadd.f32 %v2087_v26, %v2332_v24  ;;  %v516_v29 = vpop.f32.mrb[1].mxu0  ;;  %v836_v30 = vpop.f32.mrb[1].mxu1 }
 0x11d   :  { %v1549_v31 = vadd.f32 %v2332_v24, %v516_v29  ;;  %v1613_v32 = vadd.f32 %v2332_v24, %v836_v30 }
 0x11e   :  { %1679 = vst.msk [vmem:[%s2977_s3 + $0x8] sm:$0xff] %vm1677_vm0, %v1550_v27  ;;  %1743 = vst.msk [vmem:[%s2977_s3 + $0x208] sm:$0xff] %vm1677_vm0, %v1614_v28 }
 0x11f   :  { %1678 = vst.msk [vmem:[%s2977_s3] sm:$0xff] %vm1677_vm0, %v1549_v31  ;;  %1742 = vst.msk [vmem:[%s2977_s3 + $0x200] sm:$0xff] %vm1677_vm0, %v1613_v32  ;;  %v1994_v33 = vpop.f32.mrb[2].mxu0  ;;  %v2090_v34 = vpop.f32.mrb[2].mxu1 }
 0x120   :  { %v1552_v35 = vadd.f32 %v1994_v33, %v2332_v24  ;;  %v1616_v36 = vadd.f32 %v2090_v34, %v2332_v24  ;;  %v526_v37 = vpop.f32.mrb[3].mxu0  ;;  %v846_v38 = vpop.f32.mrb[3].mxu1 }
 0x121   :  { %v1551_v39 = vadd.f32 %v2332_v24, %v526_v37  ;;  %v1615_v40 = vadd.f32 %v2332_v24, %v846_v38 }
 0x122   :  { %1681 = vst.msk [vmem:[%s2977_s3 + $0x18] sm:$0xff] %vm1677_vm0, %v1552_v35  ;;  %1745 = vst.msk [vmem:[%s2977_s3 + $0x218] sm:$0xff] %vm1677_vm0, %v1616_v36 }
 0x123   :  { %1680 = vst.msk [vmem:[%s2977_s3 + $0x10] sm:$0xff] %vm1677_vm0, %v1551_v39  ;;  %1744 = vst.msk [vmem:[%s2977_s3 + $0x210] sm:$0xff] %vm1677_vm0, %v1615_v40  ;;  %v1997_v41 = vpop.f32.mrb[4].mxu0  ;;  %v2093_v42 = vpop.f32.mrb[4].mxu1 }
 0x124   :  { %v1554_v43 = vadd.f32 %v1997_v41, %v2332_v24  ;;  %v1618_v44 = vadd.f32 %v2093_v42, %v2332_v24  ;;  %v536_v45 = vpop.f32.mrb[5].mxu0  ;;  %v856_v46 = vpop.f32.mrb[5].mxu1 }
 0x125   :  { %v1553_v47 = vadd.f32 %v2332_v24, %v536_v45  ;;  %v1617_v48 = vadd.f32 %v2332_v24, %v856_v46 }
 0x126   :  { %1683 = vst.msk [vmem:[%s2977_s3 + $0x28] sm:$0xff] %vm1677_vm0, %v1554_v43  ;;  %1747 = vst.msk [vmem:[%s2977_s3 + $0x228] sm:$0xff] %vm1677_vm0, %v1618_v44 }
 0x127   :  { %1682 = vst.msk [vmem:[%s2977_s3 + $0x20] sm:$0xff] %vm1677_vm0, %v1553_v47  ;;  %1746 = vst.msk [vmem:[%s2977_s3 + $0x220] sm:$0xff] %vm1677_vm0, %v1617_v48  ;;  %v2000_v49 = vpop.f32.mrb[6].mxu0  ;;  %v2096_v50 = vpop.f32.mrb[6].mxu1 }
 0x128   :  { %v1556_v51 = vadd.f32 %v2000_v49, %v2332_v24  ;;  %v1620_v52 = vadd.f32 %v2096_v50, %v2332_v24  ;;  %v546_v53 = vpop.f32.mrb[7].mxu0  ;;  %v866_v54 = vpop.f32.mrb[7].mxu1 }
 0x129   :  { %v1555_v55 = vadd.f32 %v2332_v24, %v546_v53  ;;  %v1619_v56 = vadd.f32 %v2332_v24, %v866_v54 }
 0x12a   :  { %1685 = vst.msk [vmem:[%s2977_s3 + $0x38] sm:$0xff] %vm1677_vm0, %v1556_v51  ;;  %1749 = vst.msk [vmem:[%s2977_s3 + $0x238] sm:$0xff] %vm1677_vm0, %v1620_v52 }
 0x12b   :  { %1684 = vst.msk [vmem:[%s2977_s3 + $0x30] sm:$0xff] %vm1677_vm0, %v1555_v55  ;;  %1748 = vst.msk [vmem:[%s2977_s3 + $0x230] sm:$0xff] %vm1677_vm0, %v1619_v56  ;;  %v2003_v57 = vpop.f32.mrb[8].mxu0  ;;  %v2099_v58 = vpop.f32.mrb[8].mxu1 }
 0x12c   :  { %v1558_v59 = vadd.f32 %v2003_v57, %v2332_v24  ;;  %v1622_v60 = vadd.f32 %v2099_v58, %v2332_v24  ;;  %v556_v61 = vpop.f32.mrb[9].mxu0  ;;  %v876_v62 = vpop.f32.mrb[9].mxu1 }
 0x12d   :  { %v1557_v63 = vadd.f32 %v2332_v24, %v556_v61  ;;  %v1621_v0 = vadd.f32 %v2332_v24, %v876_v62 }
 0x12e   :  { %1687 = vst.msk [vmem:[%s2977_s3 + $0x48] sm:$0xff] %vm1677_vm0, %v1558_v59  ;;  %1751 = vst.msk [vmem:[%s2977_s3 + $0x248] sm:$0xff] %vm1677_vm0, %v1622_v60 }
 0x12f   :  { %1686 = vst.msk [vmem:[%s2977_s3 + $0x40] sm:$0xff] %vm1677_vm0, %v1557_v63  ;;  %1750 = vst.msk [vmem:[%s2977_s3 + $0x240] sm:$0xff] %vm1677_vm0, %v1621_v0  ;;  %v2006_v1 = vpop.f32.mrb[10].mxu0  ;;  %v2102_v2 = vpop.f32.mrb[10].mxu1 }
 0x130   :  { %v1560_v3 = vadd.f32 %v2006_v1, %v2332_v24  ;;  %v1624_v4 = vadd.f32 %v2102_v2, %v2332_v24  ;;  %v566_v5 = vpop.f32.mrb[11].mxu0  ;;  %v886_v6 = vpop.f32.mrb[11].mxu1 }
 0x131   :  { %v1559_v7 = vadd.f32 %v2332_v24, %v566_v5  ;;  %v1623_v8 = vadd.f32 %v2332_v24, %v886_v6 }
 0x132   :  { %1689 = vst.msk [vmem:[%s2977_s3 + $0x58] sm:$0xff] %vm1677_vm0, %v1560_v3  ;;  %1753 = vst.msk [vmem:[%s2977_s3 + $0x258] sm:$0xff] %vm1677_vm0, %v1624_v4 }
 0x133   :  { %1688 = vst.msk [vmem:[%s2977_s3 + $0x50] sm:$0xff] %vm1677_vm0, %v1559_v7  ;;  %1752 = vst.msk [vmem:[%s2977_s3 + $0x250] sm:$0xff] %vm1677_vm0, %v1623_v8  ;;  %v2009_v9 = vpop.f32.mrb[12].mxu0  ;;  %v2105_v10 = vpop.f32.mrb[12].mxu1 }
 0x134   :  { %v1562_v11 = vadd.f32 %v2009_v9, %v2332_v24  ;;  %v1626_v12 = vadd.f32 %v2105_v10, %v2332_v24  ;;  %v576_v13 = vpop.f32.mrb[13].mxu0  ;;  %v896_v14 = vpop.f32.mrb[13].mxu1 }
 0x135   :  { %v1561_v15 = vadd.f32 %v2332_v24, %v576_v13  ;;  %v1625_v16 = vadd.f32 %v2332_v24, %v896_v14 }
 0x136   :  { %1691 = vst.msk [vmem:[%s2977_s3 + $0x68] sm:$0xff] %vm1677_vm0, %v1562_v11  ;;  %1755 = vst.msk [vmem:[%s2977_s3 + $0x268] sm:$0xff] %vm1677_vm0, %v1626_v12 }
 0x137   :  { %1690 = vst.msk [vmem:[%s2977_s3 + $0x60] sm:$0xff] %vm1677_vm0, %v1561_v15  ;;  %1754 = vst.msk [vmem:[%s2977_s3 + $0x260] sm:$0xff] %vm1677_vm0, %v1625_v16  ;;  %v2012_v17 = vpop.f32.mrb[14].mxu0  ;;  %v2108_v18 = vpop.f32.mrb[14].mxu1 }
 0x138   :  { %v1564_v19 = vadd.f32 %v2012_v17, %v2332_v24  ;;  %v1628_v20 = vadd.f32 %v2108_v18, %v2332_v24  ;;  %v586_v21 = vpop.f32.mrb[15].mxu0  ;;  %v906_v22 = vpop.f32.mrb[15].mxu1 }
 0x139   :  { %v1563_v23 = vadd.f32 %v2332_v24, %v586_v21  ;;  %v1627_v25 = vadd.f32 %v2332_v24, %v906_v22 }
 0x13a   :  { %1693 = vst.msk [vmem:[%s2977_s3 + $0x78] sm:$0xff] %vm1677_vm0, %v1564_v19  ;;  %1757 = vst.msk [vmem:[%s2977_s3 + $0x278] sm:$0xff] %vm1677_vm0, %v1628_v20 }
 0x13b   :  { %1692 = vst.msk [vmem:[%s2977_s3 + $0x70] sm:$0xff] %vm1677_vm0, %v1563_v23  ;;  %1756 = vst.msk [vmem:[%s2977_s3 + $0x270] sm:$0xff] %vm1677_vm0, %v1627_v25  ;;  %v2015_v26 = vpop.f32.mrb[16].mxu0  ;;  %v2111_v27 = vpop.f32.mrb[16].mxu1 }
 0x13c   :  { %v1566_v28 = vadd.f32 %v2015_v26, %v2332_v24  ;;  %v1630_v29 = vadd.f32 %v2111_v27, %v2332_v24  ;;  %v596_v30 = vpop.f32.mrb[17].mxu0  ;;  %v916_v31 = vpop.f32.mrb[17].mxu1 }
 0x13d   :  { %v1565_v32 = vadd.f32 %v2332_v24, %v596_v30  ;;  %v1629_v33 = vadd.f32 %v2332_v24, %v916_v31 }
 0x13e   :  { %1695 = vst.msk [vmem:[%s2977_s3 + $0x88] sm:$0xff] %vm1677_vm0, %v1566_v28  ;;  %1759 = vst.msk [vmem:[%s2977_s3 + $0x288] sm:$0xff] %vm1677_vm0, %v1630_v29 }
 0x13f   :  { %1694 = vst.msk [vmem:[%s2977_s3 + $0x80] sm:$0xff] %vm1677_vm0, %v1565_v32  ;;  %1758 = vst.msk [vmem:[%s2977_s3 + $0x280] sm:$0xff] %vm1677_vm0, %v1629_v33  ;;  %v2018_v34 = vpop.f32.mrb[18].mxu0  ;;  %v2114_v35 = vpop.f32.mrb[18].mxu1 }
 0x140   :  { %v1568_v36 = vadd.f32 %v2018_v34, %v2332_v24  ;;  %v1632_v37 = vadd.f32 %v2114_v35, %v2332_v24  ;;  %v606_v38 = vpop.f32.mrb[19].mxu0  ;;  %v926_v39 = vpop.f32.mrb[19].mxu1 }
 0x141   :  { %v1567_v40 = vadd.f32 %v2332_v24, %v606_v38  ;;  %v1631_v41 = vadd.f32 %v2332_v24, %v926_v39 }
 0x142   :  { %1697 = vst.msk [vmem:[%s2977_s3 + $0x98] sm:$0xff] %vm1677_vm0, %v1568_v36  ;;  %1761 = vst.msk [vmem:[%s2977_s3 + $0x298] sm:$0xff] %vm1677_vm0, %v1632_v37 }
 0x143   :  { %1696 = vst.msk [vmem:[%s2977_s3 + $0x90] sm:$0xff] %vm1677_vm0, %v1567_v40  ;;  %1760 = vst.msk [vmem:[%s2977_s3 + $0x290] sm:$0xff] %vm1677_vm0, %v1631_v41  ;;  %v2021_v42 = vpop.f32.mrb[20].mxu0  ;;  %v2117_v43 = vpop.f32.mrb[20].mxu1 }
 0x144   :  { %v1570_v44 = vadd.f32 %v2021_v42, %v2332_v24  ;;  %v1634_v45 = vadd.f32 %v2117_v43, %v2332_v24  ;;  %v616_v46 = vpop.f32.mrb[21].mxu0  ;;  %v936_v47 = vpop.f32.mrb[21].mxu1 }
 0x145   :  { %v1569_v48 = vadd.f32 %v2332_v24, %v616_v46  ;;  %v1633_v49 = vadd.f32 %v2332_v24, %v936_v47 }
 0x146   :  { %1699 = vst.msk [vmem:[%s2977_s3 + $0xa8] sm:$0xff] %vm1677_vm0, %v1570_v44  ;;  %1763 = vst.msk [vmem:[%s2977_s3 + $0x2a8] sm:$0xff] %vm1677_vm0, %v1634_v45 }
 0x147   :  { %1698 = vst.msk [vmem:[%s2977_s3 + $0xa0] sm:$0xff] %vm1677_vm0, %v1569_v48  ;;  %1762 = vst.msk [vmem:[%s2977_s3 + $0x2a0] sm:$0xff] %vm1677_vm0, %v1633_v49  ;;  %v2024_v50 = vpop.f32.mrb[22].mxu0  ;;  %v2120_v51 = vpop.f32.mrb[22].mxu1 }
 0x148   :  { %v1572_v52 = vadd.f32 %v2024_v50, %v2332_v24  ;;  %v1636_v53 = vadd.f32 %v2120_v51, %v2332_v24  ;;  %v626_v54 = vpop.f32.mrb[23].mxu0  ;;  %v946_v55 = vpop.f32.mrb[23].mxu1 }
 0x149   :  { %v1571_v56 = vadd.f32 %v2332_v24, %v626_v54  ;;  %v1635_v57 = vadd.f32 %v2332_v24, %v946_v55 }
 0x14a   :  { %1701 = vst.msk [vmem:[%s2977_s3 + $0xb8] sm:$0xff] %vm1677_vm0, %v1572_v52  ;;  %1765 = vst.msk [vmem:[%s2977_s3 + $0x2b8] sm:$0xff] %vm1677_vm0, %v1636_v53 }
 0x14b   :  { %1700 = vst.msk [vmem:[%s2977_s3 + $0xb0] sm:$0xff] %vm1677_vm0, %v1571_v56  ;;  %1764 = vst.msk [vmem:[%s2977_s3 + $0x2b0] sm:$0xff] %vm1677_vm0, %v1635_v57  ;;  %v2027_v58 = vpop.f32.mrb[24].mxu0  ;;  %v2123_v59 = vpop.f32.mrb[24].mxu1 }
 0x14c   :  { %v1574_v60 = vadd.f32 %v2027_v58, %v2332_v24  ;;  %v1638_v61 = vadd.f32 %v2123_v59, %v2332_v24  ;;  %v636_v62 = vpop.f32.mrb[25].mxu0  ;;  %v956_v63 = vpop.f32.mrb[25].mxu1 }
 0x14d   :  { %v1573_v0 = vadd.f32 %v2332_v24, %v636_v62  ;;  %v1637_v1 = vadd.f32 %v2332_v24, %v956_v63 }
 0x14e   :  { %1703 = vst.msk [vmem:[%s2977_s3 + $0xc8] sm:$0xff] %vm1677_vm0, %v1574_v60  ;;  %1767 = vst.msk [vmem:[%s2977_s3 + $0x2c8] sm:$0xff] %vm1677_vm0, %v1638_v61 }
 0x14f   :  { %1702 = vst.msk [vmem:[%s2977_s3 + $0xc0] sm:$0xff] %vm1677_vm0, %v1573_v0  ;;  %1766 = vst.msk [vmem:[%s2977_s3 + $0x2c0] sm:$0xff] %vm1677_vm0, %v1637_v1  ;;  %v2030_v2 = vpop.f32.mrb[26].mxu0  ;;  %v2126_v3 = vpop.f32.mrb[26].mxu1 }
 0x150   :  { %v1576_v4 = vadd.f32 %v2030_v2, %v2332_v24  ;;  %v1640_v5 = vadd.f32 %v2126_v3, %v2332_v24  ;;  %v646_v6 = vpop.f32.mrb[27].mxu0  ;;  %v966_v7 = vpop.f32.mrb[27].mxu1 }
 0x151   :  { %v1575_v8 = vadd.f32 %v2332_v24, %v646_v6  ;;  %v1639_v9 = vadd.f32 %v2332_v24, %v966_v7 }
 0x152   :  { %1705 = vst.msk [vmem:[%s2977_s3 + $0xd8] sm:$0xff] %vm1677_vm0, %v1576_v4  ;;  %1769 = vst.msk [vmem:[%s2977_s3 + $0x2d8] sm:$0xff] %vm1677_vm0, %v1640_v5 }
 0x153   :  { %1704 = vst.msk [vmem:[%s2977_s3 + $0xd0] sm:$0xff] %vm1677_vm0, %v1575_v8  ;;  %1768 = vst.msk [vmem:[%s2977_s3 + $0x2d0] sm:$0xff] %vm1677_vm0, %v1639_v9  ;;  %v2033_v10 = vpop.f32.mrb[28].mxu0  ;;  %v2129_v11 = vpop.f32.mrb[28].mxu1 }
 0x154   :  { %v1578_v12 = vadd.f32 %v2033_v10, %v2332_v24  ;;  %v1642_v13 = vadd.f32 %v2129_v11, %v2332_v24  ;;  %v656_v14 = vpop.f32.mrb[29].mxu0  ;;  %v976_v15 = vpop.f32.mrb[29].mxu1 }
 0x155   :  { %v1577_v16 = vadd.f32 %v2332_v24, %v656_v14  ;;  %v1641_v17 = vadd.f32 %v2332_v24, %v976_v15 }
 0x156   :  { %1707 = vst.msk [vmem:[%s2977_s3 + $0xe8] sm:$0xff] %vm1677_vm0, %v1578_v12  ;;  %1771 = vst.msk [vmem:[%s2977_s3 + $0x2e8] sm:$0xff] %vm1677_vm0, %v1642_v13 }
 0x157   :  { %1706 = vst.msk [vmem:[%s2977_s3 + $0xe0] sm:$0xff] %vm1677_vm0, %v1577_v16  ;;  %1770 = vst.msk [vmem:[%s2977_s3 + $0x2e0] sm:$0xff] %vm1677_vm0, %v1641_v17  ;;  %v2036_v18 = vpop.f32.mrb[30].mxu0  ;;  %v2132_v19 = vpop.f32.mrb[30].mxu1 }
 0x158   :  { %v1580_v20 = vadd.f32 %v2036_v18, %v2332_v24  ;;  %v1644_v21 = vadd.f32 %v2132_v19, %v2332_v24  ;;  %v666_v22 = vpop.f32.mrb[31].mxu0  ;;  %v986_v23 = vpop.f32.mrb[31].mxu1 }
 0x159   :  { %v1579_v25 = vadd.f32 %v2332_v24, %v666_v22  ;;  %v1643_v26 = vadd.f32 %v2332_v24, %v986_v23 }
 0x15a   :  { %1709 = vst.msk [vmem:[%s2977_s3 + $0xf8] sm:$0xff] %vm1677_vm0, %v1580_v20  ;;  %1773 = vst.msk [vmem:[%s2977_s3 + $0x2f8] sm:$0xff] %vm1677_vm0, %v1644_v21 }
 0x15b   :  { %1708 = vst.msk [vmem:[%s2977_s3 + $0xf0] sm:$0xff] %vm1677_vm0, %v1579_v25  ;;  %1772 = vst.msk [vmem:[%s2977_s3 + $0x2f0] sm:$0xff] %vm1677_vm0, %v1643_v26  ;;  %v2039_v27 = vpop.f32.mrb[32].mxu0  ;;  %v2135_v28 = vpop.f32.mrb[32].mxu1 }
 0x15c   :  { %v1582_v29 = vadd.f32 %v2039_v27, %v2332_v24  ;;  %v1646_v30 = vadd.f32 %v2135_v28, %v2332_v24  ;;  %v676_v31 = vpop.f32.mrb[33].mxu0  ;;  %v996_v32 = vpop.f32.mrb[33].mxu1 }
 0x15d   :  { %v1581_v33 = vadd.f32 %v2332_v24, %v676_v31  ;;  %v1645_v34 = vadd.f32 %v2332_v24, %v996_v32 }
 0x15e   :  { %1711 = vst.msk [vmem:[%s2977_s3 + $0x108] sm:$0xff] %vm1677_vm0, %v1582_v29  ;;  %1775 = vst.msk [vmem:[%s2977_s3 + $0x308] sm:$0xff] %vm1677_vm0, %v1646_v30 }
 0x15f   :  { %1710 = vst.msk [vmem:[%s2977_s3 + $0x100] sm:$0xff] %vm1677_vm0, %v1581_v33  ;;  %1774 = vst.msk [vmem:[%s2977_s3 + $0x300] sm:$0xff] %vm1677_vm0, %v1645_v34  ;;  %v2042_v35 = vpop.f32.mrb[34].mxu0  ;;  %v2138_v36 = vpop.f32.mrb[34].mxu1 }
 0x160   :  { %v1584_v37 = vadd.f32 %v2042_v35, %v2332_v24  ;;  %v1648_v38 = vadd.f32 %v2138_v36, %v2332_v24  ;;  %v686_v39 = vpop.f32.mrb[35].mxu0  ;;  %v1006_v40 = vpop.f32.mrb[35].mxu1 }
 0x161   :  { %v1583_v41 = vadd.f32 %v2332_v24, %v686_v39  ;;  %v1647_v42 = vadd.f32 %v2332_v24, %v1006_v40 }
 0x162   :  { %1713 = vst.msk [vmem:[%s2977_s3 + $0x118] sm:$0xff] %vm1677_vm0, %v1584_v37  ;;  %1777 = vst.msk [vmem:[%s2977_s3 + $0x318] sm:$0xff] %vm1677_vm0, %v1648_v38 }
 0x163   :  { %1712 = vst.msk [vmem:[%s2977_s3 + $0x110] sm:$0xff] %vm1677_vm0, %v1583_v41  ;;  %1776 = vst.msk [vmem:[%s2977_s3 + $0x310] sm:$0xff] %vm1677_vm0, %v1647_v42  ;;  %v2045_v43 = vpop.f32.mrb[36].mxu0  ;;  %v2141_v44 = vpop.f32.mrb[36].mxu1 }
 0x164   :  { %v1586_v45 = vadd.f32 %v2045_v43, %v2332_v24  ;;  %v1650_v46 = vadd.f32 %v2141_v44, %v2332_v24  ;;  %v696_v47 = vpop.f32.mrb[37].mxu0  ;;  %v1016_v48 = vpop.f32.mrb[37].mxu1 }
 0x165   :  { %v1585_v49 = vadd.f32 %v2332_v24, %v696_v47  ;;  %v1649_v50 = vadd.f32 %v2332_v24, %v1016_v48 }
 0x166   :  { %1715 = vst.msk [vmem:[%s2977_s3 + $0x128] sm:$0xff] %vm1677_vm0, %v1586_v45  ;;  %1779 = vst.msk [vmem:[%s2977_s3 + $0x328] sm:$0xff] %vm1677_vm0, %v1650_v46 }
 0x167   :  { %1714 = vst.msk [vmem:[%s2977_s3 + $0x120] sm:$0xff] %vm1677_vm0, %v1585_v49  ;;  %1778 = vst.msk [vmem:[%s2977_s3 + $0x320] sm:$0xff] %vm1677_vm0, %v1649_v50  ;;  %v2048_v51 = vpop.f32.mrb[38].mxu0  ;;  %v2144_v52 = vpop.f32.mrb[38].mxu1 }
 0x168   :  { %v1588_v53 = vadd.f32 %v2048_v51, %v2332_v24  ;;  %v1652_v54 = vadd.f32 %v2144_v52, %v2332_v24  ;;  %v706_v55 = vpop.f32.mrb[39].mxu0  ;;  %v1026_v56 = vpop.f32.mrb[39].mxu1 }
 0x169   :  { %v1587_v57 = vadd.f32 %v2332_v24, %v706_v55  ;;  %v1651_v58 = vadd.f32 %v2332_v24, %v1026_v56 }
 0x16a   :  { %1717 = vst.msk [vmem:[%s2977_s3 + $0x138] sm:$0xff] %vm1677_vm0, %v1588_v53  ;;  %1781 = vst.msk [vmem:[%s2977_s3 + $0x338] sm:$0xff] %vm1677_vm0, %v1652_v54 }
 0x16b   :  { %1716 = vst.msk [vmem:[%s2977_s3 + $0x130] sm:$0xff] %vm1677_vm0, %v1587_v57  ;;  %1780 = vst.msk [vmem:[%s2977_s3 + $0x330] sm:$0xff] %vm1677_vm0, %v1651_v58  ;;  %v2051_v59 = vpop.f32.mrb[40].mxu0  ;;  %v2147_v60 = vpop.f32.mrb[40].mxu1 }
 0x16c   :  { %v1590_v61 = vadd.f32 %v2051_v59, %v2332_v24  ;;  %v1654_v62 = vadd.f32 %v2147_v60, %v2332_v24  ;;  %v716_v63 = vpop.f32.mrb[41].mxu0  ;;  %v1036_v0 = vpop.f32.mrb[41].mxu1 }
 0x16d   :  { %v1589_v1 = vadd.f32 %v2332_v24, %v716_v63  ;;  %v1653_v2 = vadd.f32 %v2332_v24, %v1036_v0 }
 0x16e   :  { %1719 = vst.msk [vmem:[%s2977_s3 + $0x148] sm:$0xff] %vm1677_vm0, %v1590_v61  ;;  %1783 = vst.msk [vmem:[%s2977_s3 + $0x348] sm:$0xff] %vm1677_vm0, %v1654_v62 }
 0x16f   :  { %1718 = vst.msk [vmem:[%s2977_s3 + $0x140] sm:$0xff] %vm1677_vm0, %v1589_v1  ;;  %1782 = vst.msk [vmem:[%s2977_s3 + $0x340] sm:$0xff] %vm1677_vm0, %v1653_v2  ;;  %v2054_v3 = vpop.f32.mrb[42].mxu0  ;;  %v2150_v4 = vpop.f32.mrb[42].mxu1 }
 0x170   :  { %v1592_v5 = vadd.f32 %v2054_v3, %v2332_v24  ;;  %v1656_v6 = vadd.f32 %v2150_v4, %v2332_v24  ;;  %v726_v7 = vpop.f32.mrb[43].mxu0  ;;  %v1046_v8 = vpop.f32.mrb[43].mxu1 }
 0x171   :  { %v1591_v9 = vadd.f32 %v2332_v24, %v726_v7  ;;  %v1655_v10 = vadd.f32 %v2332_v24, %v1046_v8 }
 0x172   :  { %1721 = vst.msk [vmem:[%s2977_s3 + $0x158] sm:$0xff] %vm1677_vm0, %v1592_v5  ;;  %1785 = vst.msk [vmem:[%s2977_s3 + $0x358] sm:$0xff] %vm1677_vm0, %v1656_v6 }
 0x173   :  { %1720 = vst.msk [vmem:[%s2977_s3 + $0x150] sm:$0xff] %vm1677_vm0, %v1591_v9  ;;  %1784 = vst.msk [vmem:[%s2977_s3 + $0x350] sm:$0xff] %vm1677_vm0, %v1655_v10  ;;  %v2057_v11 = vpop.f32.mrb[44].mxu0  ;;  %v2153_v12 = vpop.f32.mrb[44].mxu1 }
 0x174   :  { %v1594_v13 = vadd.f32 %v2057_v11, %v2332_v24  ;;  %v1658_v14 = vadd.f32 %v2153_v12, %v2332_v24  ;;  %v736_v15 = vpop.f32.mrb[45].mxu0  ;;  %v1056_v16 = vpop.f32.mrb[45].mxu1 }
 0x175   :  { %v1593_v17 = vadd.f32 %v2332_v24, %v736_v15  ;;  %v1657_v18 = vadd.f32 %v2332_v24, %v1056_v16 }
 0x176   :  { %1723 = vst.msk [vmem:[%s2977_s3 + $0x168] sm:$0xff] %vm1677_vm0, %v1594_v13  ;;  %1787 = vst.msk [vmem:[%s2977_s3 + $0x368] sm:$0xff] %vm1677_vm0, %v1658_v14 }
 0x177   :  { %1722 = vst.msk [vmem:[%s2977_s3 + $0x160] sm:$0xff] %vm1677_vm0, %v1593_v17  ;;  %1786 = vst.msk [vmem:[%s2977_s3 + $0x360] sm:$0xff] %vm1677_vm0, %v1657_v18  ;;  %v2060_v19 = vpop.f32.mrb[46].mxu0  ;;  %v2156_v20 = vpop.f32.mrb[46].mxu1 }
 0x178   :  { %v1596_v21 = vadd.f32 %v2060_v19, %v2332_v24  ;;  %v1660_v22 = vadd.f32 %v2156_v20, %v2332_v24  ;;  %v746_v23 = vpop.f32.mrb[47].mxu0  ;;  %v1066_v25 = vpop.f32.mrb[47].mxu1 }
 0x179   :  { %v1595_v26 = vadd.f32 %v2332_v24, %v746_v23  ;;  %v1659_v27 = vadd.f32 %v2332_v24, %v1066_v25 }
 0x17a   :  { %1725 = vst.msk [vmem:[%s2977_s3 + $0x178] sm:$0xff] %vm1677_vm0, %v1596_v21  ;;  %1789 = vst.msk [vmem:[%s2977_s3 + $0x378] sm:$0xff] %vm1677_vm0, %v1660_v22 }
 0x17b   :  { %1724 = vst.msk [vmem:[%s2977_s3 + $0x170] sm:$0xff] %vm1677_vm0, %v1595_v26  ;;  %1788 = vst.msk [vmem:[%s2977_s3 + $0x370] sm:$0xff] %vm1677_vm0, %v1659_v27  ;;  %v2063_v28 = vpop.f32.mrb[48].mxu0  ;;  %v2159_v29 = vpop.f32.mrb[48].mxu1 }
 0x17c   :  { %v1598_v30 = vadd.f32 %v2063_v28, %v2332_v24  ;;  %v1662_v31 = vadd.f32 %v2159_v29, %v2332_v24  ;;  %v756_v32 = vpop.f32.mrb[49].mxu0  ;;  %v1076_v33 = vpop.f32.mrb[49].mxu1 }
 0x17d   :  { %v1597_v34 = vadd.f32 %v2332_v24, %v756_v32  ;;  %v1661_v35 = vadd.f32 %v2332_v24, %v1076_v33 }
 0x17e   :  { %1727 = vst.msk [vmem:[%s2977_s3 + $0x188] sm:$0xff] %vm1677_vm0, %v1598_v30  ;;  %1791 = vst.msk [vmem:[%s2977_s3 + $0x388] sm:$0xff] %vm1677_vm0, %v1662_v31 }
 0x17f   :  { %1726 = vst.msk [vmem:[%s2977_s3 + $0x180] sm:$0xff] %vm1677_vm0, %v1597_v34  ;;  %1790 = vst.msk [vmem:[%s2977_s3 + $0x380] sm:$0xff] %vm1677_vm0, %v1661_v35  ;;  %v2066_v36 = vpop.f32.mrb[50].mxu0  ;;  %v2162_v37 = vpop.f32.mrb[50].mxu1 }
 0x180   :  { %v1600_v38 = vadd.f32 %v2066_v36, %v2332_v24  ;;  %v1664_v39 = vadd.f32 %v2162_v37, %v2332_v24  ;;  %v766_v40 = vpop.f32.mrb[51].mxu0  ;;  %v1086_v41 = vpop.f32.mrb[51].mxu1 }
 0x181   :  { %v1599_v42 = vadd.f32 %v2332_v24, %v766_v40  ;;  %v1663_v43 = vadd.f32 %v2332_v24, %v1086_v41 }
 0x182   :  { %1729 = vst.msk [vmem:[%s2977_s3 + $0x198] sm:$0xff] %vm1677_vm0, %v1600_v38  ;;  %1793 = vst.msk [vmem:[%s2977_s3 + $0x398] sm:$0xff] %vm1677_vm0, %v1664_v39 }
 0x183   :  { %1728 = vst.msk [vmem:[%s2977_s3 + $0x190] sm:$0xff] %vm1677_vm0, %v1599_v42  ;;  %1792 = vst.msk [vmem:[%s2977_s3 + $0x390] sm:$0xff] %vm1677_vm0, %v1663_v43  ;;  %v2069_v44 = vpop.f32.mrb[52].mxu0  ;;  %v2165_v45 = vpop.f32.mrb[52].mxu1 }
 0x184   :  { %v1602_v46 = vadd.f32 %v2069_v44, %v2332_v24  ;;  %v1666_v47 = vadd.f32 %v2165_v45, %v2332_v24  ;;  %v776_v48 = vpop.f32.mrb[53].mxu0  ;;  %v1096_v49 = vpop.f32.mrb[53].mxu1 }
 0x185   :  { %v1601_v50 = vadd.f32 %v2332_v24, %v776_v48  ;;  %v1665_v51 = vadd.f32 %v2332_v24, %v1096_v49 }
 0x186   :  { %1731 = vst.msk [vmem:[%s2977_s3 + $0x1a8] sm:$0xff] %vm1677_vm0, %v1602_v46  ;;  %1795 = vst.msk [vmem:[%s2977_s3 + $0x3a8] sm:$0xff] %vm1677_vm0, %v1666_v47 }
 0x187   :  { %1730 = vst.msk [vmem:[%s2977_s3 + $0x1a0] sm:$0xff] %vm1677_vm0, %v1601_v50  ;;  %1794 = vst.msk [vmem:[%s2977_s3 + $0x3a0] sm:$0xff] %vm1677_vm0, %v1665_v51  ;;  %v2072_v52 = vpop.f32.mrb[54].mxu0  ;;  %v2168_v53 = vpop.f32.mrb[54].mxu1 }
 0x188   :  { %v1604_v54 = vadd.f32 %v2072_v52, %v2332_v24  ;;  %v1668_v55 = vadd.f32 %v2168_v53, %v2332_v24  ;;  %v786_v56 = vpop.f32.mrb[55].mxu0  ;;  %v1106_v57 = vpop.f32.mrb[55].mxu1 }
 0x189   :  { %v1603_v58 = vadd.f32 %v2332_v24, %v786_v56  ;;  %v1667_v59 = vadd.f32 %v2332_v24, %v1106_v57 }
 0x18a   :  { %1733 = vst.msk [vmem:[%s2977_s3 + $0x1b8] sm:$0xff] %vm1677_vm0, %v1604_v54  ;;  %1797 = vst.msk [vmem:[%s2977_s3 + $0x3b8] sm:$0xff] %vm1677_vm0, %v1668_v55 }
 0x18b   :  { %1732 = vst.msk [vmem:[%s2977_s3 + $0x1b0] sm:$0xff] %vm1677_vm0, %v1603_v58  ;;  %1796 = vst.msk [vmem:[%s2977_s3 + $0x3b0] sm:$0xff] %vm1677_vm0, %v1667_v59  ;;  %v2075_v60 = vpop.f32.mrb[56].mxu0  ;;  %v2171_v61 = vpop.f32.mrb[56].mxu1 }
 0x18c   :  { %v1606_v62 = vadd.f32 %v2075_v60, %v2332_v24  ;;  %v1670_v63 = vadd.f32 %v2171_v61, %v2332_v24  ;;  %v796_v0 = vpop.f32.mrb[57].mxu0  ;;  %v1116_v1 = vpop.f32.mrb[57].mxu1 }
 0x18d   :  { %v1605_v2 = vadd.f32 %v2332_v24, %v796_v0  ;;  %v1669_v3 = vadd.f32 %v2332_v24, %v1116_v1 }
 0x18e   :  { %1735 = vst.msk [vmem:[%s2977_s3 + $0x1c8] sm:$0xff] %vm1677_vm0, %v1606_v62  ;;  %1799 = vst.msk [vmem:[%s2977_s3 + $0x3c8] sm:$0xff] %vm1677_vm0, %v1670_v63 }
 0x18f   :  { %1734 = vst.msk [vmem:[%s2977_s3 + $0x1c0] sm:$0xff] %vm1677_vm0, %v1605_v2  ;;  %1798 = vst.msk [vmem:[%s2977_s3 + $0x3c0] sm:$0xff] %vm1677_vm0, %v1669_v3  ;;  %v2078_v4 = vpop.f32.mrb[58].mxu0  ;;  %v2174_v5 = vpop.f32.mrb[58].mxu1 }
 0x190   :  { %v1608_v6 = vadd.f32 %v2078_v4, %v2332_v24  ;;  %v1672_v7 = vadd.f32 %v2174_v5, %v2332_v24  ;;  %v806_v8 = vpop.f32.mrb[59].mxu0  ;;  %v1126_v9 = vpop.f32.mrb[59].mxu1 }
 0x191   :  { %v1607_v10 = vadd.f32 %v2332_v24, %v806_v8  ;;  %v1671_v11 = vadd.f32 %v2332_v24, %v1126_v9 }
 0x192   :  { %1737 = vst.msk [vmem:[%s2977_s3 + $0x1d8] sm:$0xff] %vm1677_vm0, %v1608_v6  ;;  %1801 = vst.msk [vmem:[%s2977_s3 + $0x3d8] sm:$0xff] %vm1677_vm0, %v1672_v7 }
 0x193   :  { %1736 = vst.msk [vmem:[%s2977_s3 + $0x1d0] sm:$0xff] %vm1677_vm0, %v1607_v10  ;;  %1800 = vst.msk [vmem:[%s2977_s3 + $0x3d0] sm:$0xff] %vm1677_vm0, %v1671_v11  ;;  %v2081_v12 = vpop.f32.mrb[60].mxu0  ;;  %v2177_v13 = vpop.f32.mrb[60].mxu1 }
 0x194   :  { %v1610_v14 = vadd.f32 %v2081_v12, %v2332_v24  ;;  %v1674_v15 = vadd.f32 %v2177_v13, %v2332_v24  ;;  %v816_v16 = vpop.f32.mrb[61].mxu0  ;;  %v1136_v17 = vpop.f32.mrb[61].mxu1 }
 0x195   :  { %v1609_v18 = vadd.f32 %v2332_v24, %v816_v16  ;;  %v1673_v19 = vadd.f32 %v2332_v24, %v1136_v17 }
 0x196   :  { %1739 = vst.msk [vmem:[%s2977_s3 + $0x1e8] sm:$0xff] %vm1677_vm0, %v1610_v14  ;;  %1803 = vst.msk [vmem:[%s2977_s3 + $0x3e8] sm:$0xff] %vm1677_vm0, %v1674_v15 }
 0x197   :  { %1738 = vst.msk [vmem:[%s2977_s3 + $0x1e0] sm:$0xff] %vm1677_vm0, %v1609_v18  ;;  %1802 = vst.msk [vmem:[%s2977_s3 + $0x3e0] sm:$0xff] %vm1677_vm0, %v1673_v19  ;;  %v2084_v20 = vpop.f32.mrb[62].mxu0  ;;  %v2180_v21 = vpop.f32.mrb[62].mxu1 }
 0x198   :  { %v1612_v22 = vadd.f32 %v2084_v20, %v2332_v24  ;;  %v1676_v23 = vadd.f32 %v2180_v21, %v2332_v24  ;;  %v826_v25 = vpop.f32.mrb[63].mxu0  ;;  %v1146_v26 = vpop.f32.mrb[63].mxu1 }
 0x199   :  { %v1611_v27 = vadd.f32 %v2332_v24, %v826_v25  ;;  %v1675_v28 = vadd.f32 %v2332_v24, %v1146_v26 }
 0x19a   :  { %1741 = vst.msk [vmem:[%s2977_s3 + $0x1f8] sm:$0xff] %vm1677_vm0, %v1612_v22  ;;  %1805 = vst.msk [vmem:[%s2977_s3 + $0x3f8] sm:$0xff] %vm1677_vm0, %v1676_v23 }
 0x19b   :  { %1740 = vst.msk [vmem:[%s2977_s3 + $0x1f0] sm:$0xff] %vm1677_vm0, %v1611_v27  ;;  %1804 = vst.msk [vmem:[%s2977_s3 + $0x3f0] sm:$0xff] %vm1677_vm0, %v1675_v28 }
 0x19c   :  { %1810 = vsyncpa [#allocation4], 1 }
 0x19d   :  { %1811 = vsyncpa [#allocation6], 1 }

</bundles_post_ra>
